<compile_context>
chip_gen: v5e
topology: v5e:2x2
jax: 0.10.0
libtpu: 0.0.40
codegen_flags: <defaults>
</compile_context>

<pallas_src>
import jax
import jax.numpy as jnp
from jax.experimental import pallas as pl
from jax.experimental.pallas import tpu as pltpu

STATE_SIZE = 6
ACTION_SIZE = 3
HIDDEN = 256

S_PAD = 128   # padded state-feature dim (K of fc1)
A_PAD = 128   # padded action dim (N of fc3 / output lanes)
TM = 128      # batch rows per grid step


def _mlp(x_ref, w1_ref, b1_ref, w2_ref, b2_ref, w3_ref, b3_ref):
    """Shared body: bf16 matmuls with f32 accumulation, f32 bias + ReLU."""
    h1 = jnp.dot(x_ref[...], w1_ref[...], preferred_element_type=jnp.float32)
    h1 = jnp.maximum(h1 + b1_ref[...], 0.0).astype(jnp.bfloat16)
    h2 = jnp.dot(h1, w2_ref[...], preferred_element_type=jnp.float32)
    h2 = jnp.maximum(h2 + b2_ref[...], 0.0).astype(jnp.bfloat16)
    q = jnp.dot(h2, w3_ref[...], preferred_element_type=jnp.float32)
    return q + b3_ref[...]                              # (TM, A_PAD) f32


def dqn_kernel(x_ref, w1_ref, b1_ref, w2_ref, b2_ref, w3_ref, b3_ref, q_ref):
    q_ref[...] = _mlp(x_ref, w1_ref, b1_ref, w2_ref, b2_ref, w3_ref, b3_ref)


def dqn_act_kernel(x_ref, w1_ref, b1_ref, w2_ref, b2_ref, w3_ref, b3_ref,
                   q_ref, act_ref):
    q = _mlp(x_ref, w1_ref, b1_ref, w2_ref, b2_ref, w3_ref, b3_ref)
    q_ref[...] = q
    # Fused greedy-action selection over the real ACTION_SIZE lanes only.
    lane = jax.lax.broadcasted_iota(jnp.int32, q.shape, 1)
    q_m = jnp.where(lane < ACTION_SIZE, q, -jnp.inf)
    m = jnp.max(q_m, axis=-1, keepdims=True)
    # first lane achieving the max == argmax (first-occurrence tie convention)
    act = jnp.min(jnp.where(q_m >= m, lane, A_PAD), axis=-1, keepdims=True)
    act_ref[...] = act.astype(jnp.int32)


def _pad2(a, rows, cols):
    r, c = a.shape
    return jnp.pad(a, ((0, rows - r), (0, cols - c)))


def prepare_params(params):
    """Cast weights to bf16 and zero-pad to MXU/lane-friendly shapes (once)."""
    w1, b1, w2, b2, w3, b3 = params
    return (
        _pad2(w1, S_PAD, HIDDEN).astype(jnp.bfloat16),    # (128, 256)
        b1.astype(jnp.float32),                           # (1, 256)
        w2.astype(jnp.bfloat16),                          # (256, 256)
        b2.astype(jnp.float32),                           # (1, 256)
        _pad2(w3, HIDDEN, A_PAD).astype(jnp.bfloat16),    # (256, 128)
        _pad2(b3, 1, A_PAD).astype(jnp.float32),          # (1, 128)
    )


def _pad_batch(x):
    """Cast to bf16 and zero-pad (B, 6) -> (ceil(B/TM)*TM, 128)."""
    b = x.shape[0]
    bp = max(TM, ((b + TM - 1) // TM) * TM)
    xp = jnp.pad(x.astype(jnp.bfloat16),
                 ((0, bp - b), (0, S_PAD - STATE_SIZE)))
    return xp, bp


def _grid_and_in_specs(bp):
    grid = (bp // TM,)
    in_specs = [
        pl.BlockSpec((TM, S_PAD), lambda i: (i, 0)),       # x tile: streamed
        pl.BlockSpec((S_PAD, HIDDEN), lambda i: (0, 0)),   # weights / biases:
        pl.BlockSpec((1, HIDDEN), lambda i: (0, 0)),       #   VMEM-resident
        pl.BlockSpec((HIDDEN, HIDDEN), lambda i: (0, 0)),  #   across steps
        pl.BlockSpec((1, HIDDEN), lambda i: (0, 0)),
        pl.BlockSpec((HIDDEN, A_PAD), lambda i: (0, 0)),
        pl.BlockSpec((1, A_PAD), lambda i: (0, 0)),
    ]
    return grid, in_specs


@jax.jit
def dqn_forward(x, prepared_params):
    """Q-values, shape (B, ACTION_SIZE) float32."""
    b = x.shape[0]
    xp, bp = _pad_batch(x)
    grid, in_specs = _grid_and_in_specs(bp)
    qp = pl.pallas_call(
        dqn_kernel,
        out_shape=jax.ShapeDtypeStruct((bp, A_PAD), jnp.float32),
        grid=grid,
        in_specs=in_specs,
        out_specs=pl.BlockSpec((TM, A_PAD), lambda i: (i, 0)),
        compiler_params=pltpu.CompilerParams(dimension_semantics=("parallel",)),
    )(xp, *prepared_params)
    return qp[:b, :ACTION_SIZE]


@jax.jit
def dqn_act(x, prepared_params):
    """Fused forward + greedy action. Returns (q (B, 3) f32, action (B,) i32)."""
    b = x.shape[0]
    xp, bp = _pad_batch(x)
    grid, in_specs = _grid_and_in_specs(bp)
    qp, actp = pl.pallas_call(
        dqn_act_kernel,
        out_shape=(jax.ShapeDtypeStruct((bp, A_PAD), jnp.float32),
                   jax.ShapeDtypeStruct((bp, 1), jnp.int32)),
        grid=grid,
        in_specs=in_specs,
        out_specs=(pl.BlockSpec((TM, A_PAD), lambda i: (i, 0)),
                   pl.BlockSpec((TM, 1), lambda i: (i, 0))),
        compiler_params=pltpu.CompilerParams(dimension_semantics=("parallel",)),
    )(xp, *prepared_params)
    return qp[:b, :ACTION_SIZE], actp[:b, 0]


def init_params(key):
    """Deterministic init mimicking PyTorch Linear default (U[-1/sqrt(fan_in), +])."""
    def linear(k, fan_in, fan_out):
        kw, kb = jax.random.split(k)
        bound = 1.0 / jnp.sqrt(fan_in)
        w = jax.random.uniform(kw, (fan_in, fan_out), jnp.float32, -bound, bound)
        b = jax.random.uniform(kb, (1, fan_out), jnp.float32, -bound, bound)
        return w, b

    k1, k2, k3 = jax.random.split(key, 3)
    w1, b1 = linear(k1, STATE_SIZE, HIDDEN)
    w2, b2 = linear(k2, HIDDEN, HIDDEN)
    w3, b3 = linear(k3, HIDDEN, ACTION_SIZE)
    return w1, b1, w2, b2, w3, b3


def reference_forward(x, params):
    """Pure-JAX reference mirroring the kernel's bf16-weight / f32-acc math."""
    w1, b1, w2, b2, w3, b3 = params
    bf = jnp.bfloat16
    h1 = jnp.maximum(jnp.dot(x.astype(bf), w1.astype(bf),
                             preferred_element_type=jnp.float32) + b1, 0.0)
    h2 = jnp.maximum(jnp.dot(h1.astype(bf), w2.astype(bf),
                             preferred_element_type=jnp.float32) + b2, 0.0)
    return jnp.dot(h2.astype(bf), w3.astype(bf),
                   preferred_element_type=jnp.float32) + b3


if __name__ == "__main__":
    key = jax.random.PRNGKey(0)
    kp, kx = jax.random.split(key)
    params = init_params(kp)
    prepared = prepare_params(params)

    # Small batch of states, consistent with the DQN act()/replay usage.
    B = 8
    x = jax.random.normal(kx, (B, STATE_SIZE), jnp.float32)

    q = dqn_forward(x, prepared)
    q2, act = dqn_act(x, prepared)
    jax.block_until_ready((q, q2, act))

    q_ref = reference_forward(x, params)
    assert q.shape == (B, ACTION_SIZE)
    assert jnp.allclose(q, q_ref, atol=2e-2, rtol=2e-2), "q mismatch vs reference"
    assert jnp.allclose(q2, q_ref, atol=2e-2, rtol=2e-2), "q (act path) mismatch"
    assert jnp.array_equal(act, jnp.argmax(q2, axis=-1).astype(jnp.int32)), \
        "fused argmax mismatch"

    # Larger batch exercises the multi-tile grid (2 x TM=128 rows, shardable
    # across v7x's two TensorCores via the "parallel" dimension semantics).
    BL = 256
    xl = jax.random.normal(jax.random.PRNGKey(1), (BL, STATE_SIZE), jnp.float32)
    ql = dqn_forward(xl, prepared)
    jax.block_until_ready(ql)
    assert ql.shape == (BL, ACTION_SIZE)
    assert jnp.allclose(ql, reference_forward(xl, params),
                        atol=2e-2, rtol=2e-2), "multi-tile batch mismatch"

    print("KERNEL_OK")
</pallas_src>

<mosaic_0001>
module attributes {stable_mosaic.version = 11 : i64} {
  func.func @dqn_kernel(%arg0: i32, %arg1: memref<128x128xbf16, #tpu.memory_space<vmem>>, %arg2: memref<128x256xbf16, #tpu.memory_space<vmem>>, %arg3: memref<1x256xf32, #tpu.memory_space<vmem>>, %arg4: memref<256x256xbf16, #tpu.memory_space<vmem>>, %arg5: memref<1x256xf32, #tpu.memory_space<vmem>>, %arg6: memref<256x128xbf16, #tpu.memory_space<vmem>>, %arg7: memref<1x128xf32, #tpu.memory_space<vmem>>, %arg8: memref<128x128xf32, #tpu.memory_space<vmem>>) attributes {dimension_semantics = [#tpu.dimension_semantics<parallel>], iteration_bounds = array<i64: 1>, scalar_prefetch = 0 : i64, scratch_operands = 0 : i64, tpu.core_type = #tpu.core_type<tc>, window_params = [{transform_indices = @transform_0, window_bounds = array<i64: 128, 128>}, {pipeline_mode = #tpu.pipeline_mode<synchronous>, transform_indices = @transform_1, window_bounds = array<i64: 128, 256>}, {pipeline_mode = #tpu.pipeline_mode<synchronous>, transform_indices = @transform_2, window_bounds = array<i64: 1, 256>}, {pipeline_mode = #tpu.pipeline_mode<synchronous>, transform_indices = @transform_3, window_bounds = array<i64: 256, 256>}, {pipeline_mode = #tpu.pipeline_mode<synchronous>, transform_indices = @transform_4, window_bounds = array<i64: 1, 256>}, {pipeline_mode = #tpu.pipeline_mode<synchronous>, transform_indices = @transform_5, window_bounds = array<i64: 256, 128>}, {pipeline_mode = #tpu.pipeline_mode<synchronous>, transform_indices = @transform_6, window_bounds = array<i64: 1, 128>}, {transform_indices = @transform_7, window_bounds = array<i64: 128, 128>}]} {
    %c0 = arith.constant 0 : index
    %c0_0 = arith.constant 0 : index
    %0 = vector.load %arg1[%c0, %c0_0] : memref<128x128xbf16, #tpu.memory_space<vmem>>, vector<128x128xbf16>
    %c0_1 = arith.constant 0 : index
    %c0_2 = arith.constant 0 : index
    %1 = vector.load %arg2[%c0_1, %c0_2] : memref<128x256xbf16, #tpu.memory_space<vmem>>, vector<128x256xbf16>
    %cst = arith.constant dense<0.000000e+00> : vector<128x256xf32>
    %2 = tpu.matmul %0, %1, %cst {dimension_numbers = #tpu.dot_dimension_numbers<[1], [0], [0], [1], [0, 0, 1, 1], [], []>} : vector<128x128xbf16>, vector<128x256xbf16>, vector<128x256xf32> -> vector<128x256xf32>
    %c0_3 = arith.constant 0 : index
    %c0_4 = arith.constant 0 : index
    %3 = vector.load %arg3[%c0_3, %c0_4] : memref<1x256xf32, #tpu.memory_space<vmem>>, vector<1x256xf32>
    %4 = vector.broadcast %3 : vector<1x256xf32> to vector<128x256xf32>
    %5 = arith.addf %2, %4 : vector<128x256xf32>
    %cst_5 = arith.constant 0.000000e+00 : f32
    %6 = vector.broadcast %cst_5 : f32 to vector<128x256xf32>
    %7 = arith.maximumf %5, %6 : vector<128x256xf32>
    %8 = arith.truncf %7 : vector<128x256xf32> to vector<128x256xbf16>
    %c0_6 = arith.constant 0 : index
    %c0_7 = arith.constant 0 : index
    %9 = vector.load %arg4[%c0_6, %c0_7] : memref<256x256xbf16, #tpu.memory_space<vmem>>, vector<256x256xbf16>
    %cst_8 = arith.constant dense<0.000000e+00> : vector<128x256xf32>
    %10 = tpu.matmul %8, %9, %cst_8 {dimension_numbers = #tpu.dot_dimension_numbers<[1], [0], [0], [1], [0, 0, 1, 1], [], []>} : vector<128x256xbf16>, vector<256x256xbf16>, vector<128x256xf32> -> vector<128x256xf32>
    %c0_9 = arith.constant 0 : index
    %c0_10 = arith.constant 0 : index
    %11 = vector.load %arg5[%c0_9, %c0_10] : memref<1x256xf32, #tpu.memory_space<vmem>>, vector<1x256xf32>
    %12 = vector.broadcast %11 : vector<1x256xf32> to vector<128x256xf32>
    %13 = arith.addf %10, %12 : vector<128x256xf32>
    %cst_11 = arith.constant 0.000000e+00 : f32
    %14 = vector.broadcast %cst_11 : f32 to vector<128x256xf32>
    %15 = arith.maximumf %13, %14 : vector<128x256xf32>
    %16 = arith.truncf %15 : vector<128x256xf32> to vector<128x256xbf16>
    %c0_12 = arith.constant 0 : index
    %c0_13 = arith.constant 0 : index
    %17 = vector.load %arg6[%c0_12, %c0_13] : memref<256x128xbf16, #tpu.memory_space<vmem>>, vector<256x128xbf16>
    %cst_14 = arith.constant dense<0.000000e+00> : vector<128x128xf32>
    %18 = tpu.matmul %16, %17, %cst_14 {dimension_numbers = #tpu.dot_dimension_numbers<[1], [0], [0], [1], [0, 0, 1, 1], [], []>} : vector<128x256xbf16>, vector<256x128xbf16>, vector<128x128xf32> -> vector<128x128xf32>
    %c0_15 = arith.constant 0 : index
    %c0_16 = arith.constant 0 : index
    %19 = vector.load %arg7[%c0_15, %c0_16] : memref<1x128xf32, #tpu.memory_space<vmem>>, vector<1x128xf32>
    %20 = vector.broadcast %19 : vector<1x128xf32> to vector<128x128xf32>
    %21 = arith.addf %18, %20 : vector<128x128xf32>
    %c0_17 = arith.constant 0 : index
    %c0_18 = arith.constant 0 : index
    %22 = vector.load %arg8[%c0_17, %c0_18] : memref<128x128xf32, #tpu.memory_space<vmem>>, vector<128x128xf32>
    tpu.vector_store %arg8[%c0_17, %c0_18], %21 {strides = array<i32>} : memref<128x128xf32, #tpu.memory_space<vmem>>, vector<128x128xf32>,
    return
  }
  func.func @transform_0(%arg0: i32) -> (i32, i32) {
    %c0_i32 = arith.constant 0 : i32
    %c0_i32_0 = arith.constant 0 : i32
    return %arg0, %c0_i32 : i32, i32
  }
  func.func @transform_1(%arg0: i32) -> (i32, i32) {
    %c0_i32 = arith.constant 0 : i32
    %c0_i32_0 = arith.constant 0 : i32
    %c0_i32_1 = arith.constant 0 : i32
    return %c0_i32, %c0_i32_0 : i32, i32
  }
  func.func @transform_2(%arg0: i32) -> (i32, i32) {
    %c0_i32 = arith.constant 0 : i32
    %c0_i32_0 = arith.constant 0 : i32
    %c0_i32_1 = arith.constant 0 : i32
    return %c0_i32, %c0_i32_0 : i32, i32
  }
  func.func @transform_3(%arg0: i32) -> (i32, i32) {
    %c0_i32 = arith.constant 0 : i32
    %c0_i32_0 = arith.constant 0 : i32
    %c0_i32_1 = arith.constant 0 : i32
    return %c0_i32, %c0_i32_0 : i32, i32
  }
  func.func @transform_4(%arg0: i32) -> (i32, i32) {
    %c0_i32 = arith.constant 0 : i32
    %c0_i32_0 = arith.constant 0 : i32
    %c0_i32_1 = arith.constant 0 : i32
    return %c0_i32, %c0_i32_0 : i32, i32
  }
  func.func @transform_5(%arg0: i32) -> (i32, i32) {
    %c0_i32 = arith.constant 0 : i32
    %c0_i32_0 = arith.constant 0 : i32
    %c0_i32_1 = arith.constant 0 : i32
    return %c0_i32, %c0_i32_0 : i32, i32
  }
  func.func @transform_6(%arg0: i32) -> (i32, i32) {
    %c0_i32 = arith.constant 0 : i32
    %c0_i32_0 = arith.constant 0 : i32
    %c0_i32_1 = arith.constant 0 : i32
    return %c0_i32, %c0_i32_0 : i32, i32
  }
  func.func @transform_7(%arg0: i32) -> (i32, i32) {
    %c0_i32 = arith.constant 0 : i32
    %c0_i32_0 = arith.constant 0 : i32
    return %arg0, %c0_i32 : i32, i32
  }
}

</mosaic_0001>

<bundles_post_ra>
// kernel: dqn_forward.1
= control target key start
LH: loop header
LB: loop body
LE: loop exit
PB: predicated region body
PF: predicated region fallthrough
CT: control target
= control target key end

     0   :  { %12 = vsyncpa [#allocation3], 0  ;;  %s1750_s0 = inlined_call_operand.vmem [shape: bf16[128,128], index: 0, kind: input, shape index: {}]   ;;  %s1751_s1 = inlined_call_operand.hbm [shape: bf16[128,256], index: 1, kind: input, shape index: {}]   ;;  %s1752_s2 = inlined_call_operand.vmem [shape: f32[1,256], index: 2, kind: input, shape index: {}]   ;;  %s1753_s3 = inlined_call_operand.hbm [shape: bf16[256,256], index: 3, kind: input, shape index: {}]   ;;  %s1754_s4 = inlined_call_operand.vmem [shape: f32[1,256], index: 4, kind: input, shape index: {}]   ;;  %s1755_s5 = inlined_call_operand.hbm [shape: bf16[256,128], index: 5, kind: input, shape index: {}]   ;;  %s1756_s6 = inlined_call_operand.vmem [shape: f32[1,128], index: 6, kind: input, shape index: {}]   ;;  %s1757_s7 = inlined_call_operand.vmem [shape: f32[128,128], index: 7, kind: output, shape index: {}]  }
   0x1   :  { %13 = vsyncpa [#allocation5], 0  ;;  %s35_s26 = sshll.u32 %s1753_s3, 4  ;;  %s1523_s27 = smov [#allocation4]   ;;  %s36_s26 = int_to_ptr.hbm [resolvable:$true] %s35_s26 }
   0x2   :  { %s37_s28 = sshll.u32 %s1523_s27, 4  ;;  %s20_s8 = sshll.u32 %s1751_s1, 4  ;;  %s38_s28 = int_to_ptr.vmem [resolvable:$true] %s37_s28  ;;  %s21_s8 = int_to_ptr.hbm [resolvable:$true] %s20_s8 }
   0x3   :  { %s1524_s9 = smov 128   ;;  %s1525_s10 = smov 8  }
   0x4   :  { %43 = dma.hbm_to_vmem [thread:$0]  %s36_s26, 4096, %s38_s28, [#allocation5], %s1524_s9, %s1524_s9, %s1525_s10  }
   0x5   :  { %s1526_s11 = smov [#allocation2]   ;;  %s50_s15 = sshll.u32 %s1755_s5, 4  ;;  %s51_s15 = int_to_ptr.hbm [resolvable:$true] %s50_s15 }
   0x6   :  { %s22_s12 = sshll.u32 %s1526_s11, 4  ;;  %s1527_s3 = smov [#allocation6]   ;;  %s23_s12 = int_to_ptr.vmem [resolvable:$true] %s22_s12 }
   0x7   :  { %28 = dma.hbm_to_vmem [thread:$0]  %s21_s8, 2048, %s23_s12, [#allocation3], %s1524_s9, %s1524_s9, %s1525_s10  }
   0x8   :  { %s52_s16 = sshll.u32 %s1527_s3, 4  ;;  %s1528_s17 = smov 64   ;;  %s53_s16 = int_to_ptr.vmem [resolvable:$true] %s52_s16 }
   0x9   :  { %s1529_s18 = smov 4  }
   0xa   :  { %58 = dma.hbm_to_vmem [thread:$0]  %s51_s15, 2048, %s53_s16, [#allocation5], %s1528_s17, %s1528_s17, %s1529_s18  }
   0xb   :  { %1519 = dma.done.wait [#allocation3], 2048  }
   0xc   :  { %1520 = vsyncadd [#allocation3], 4294965248 }
   0xd   :  { %1521 = dma.done.wait [#allocation5], 6144  }
   0xe   :  { %1522 = vsyncadd [#allocation5], 4294961152  ;;  %v1169_v0 = vld [vmem:[#allocation2 + $0x70] sm:$0xf]  ;;  %v1390_v1 = vld [vmem:[#allocation2 + $0x74] sm:$0xf0] }
   0xf   :  { %v1389_v2 = vld [vmem:[#allocation2 + $0x74] sm:$0xf]  ;;  %v1170_v3 = vor.u32 %v1390_v1, %v1169_v0  ;;  %v1171_v4 = vld [vmem:[#allocation2 + $0x78] sm:$0xf0]  ;;  %v1161_v5 = vld [vmem:[#allocation2 + $0x60] sm:$0xf] }
  0x10   :  { %v1388_v6 = vld [vmem:[#allocation2 + $0x64] sm:$0xf0]  ;;  %v1174_v7 = vor.u32 %v1389_v2, %v1171_v4  ;;  %v1387_v8 = vld [vmem:[#allocation2 + $0x64] sm:$0xf]  ;;  %v1163_v9 = vld [vmem:[#allocation2 + $0x68] sm:$0xf0] }
  0x11   :  { %239 = vmatpush.bf16.msra.mxu0 %v1170_v3  ;;  %v1162_v10 = vor.u32 %v1388_v6, %v1161_v5  ;;  %v1166_v11 = vor.u32 %v1387_v8, %v1163_v9  ;;  %v1153_v12 = vld [vmem:[#allocation2 + $0x50] sm:$0xf]  ;;  %v1386_v13 = vld [vmem:[#allocation2 + $0x54] sm:$0xf0]  ;;  %v1385_v14 = vld [vmem:[#allocation2 + $0x54] sm:$0xf] }
  0x12   :  { %288 = vmatpush.bf16.msra.mxu1 %v1174_v7  ;;  %v1155_v15 = vld [vmem:[#allocation2 + $0x58] sm:$0xf0]  ;;  %v1154_v16 = vor.u32 %v1386_v13, %v1153_v12  ;;  %v1145_v18 = vld [vmem:[#allocation2 + $0x40] sm:$0xf]  ;;  %v1384_v19 = vld [vmem:[#allocation2 + $0x44] sm:$0xf0] }
  0x13   :  { %v1158_v17 = vor.u32 %v1385_v14, %v1155_v15  ;;  %v1383_v20 = vld [vmem:[#allocation2 + $0x44] sm:$0xf]  ;;  %v1147_v21 = vld [vmem:[#allocation2 + $0x48] sm:$0xf0]  ;;  %v1146_v22 = vor.u32 %v1384_v19, %v1145_v18  ;;  %v1137_v24 = vld [vmem:[#allocation2 + $0x30] sm:$0xf] }
  0x14   :  { %v1150_v23 = vor.u32 %v1383_v20, %v1147_v21  ;;  %v1382_v25 = vld [vmem:[#allocation2 + $0x34] sm:$0xf0]  ;;  %v1381_v26 = vld [vmem:[#allocation2 + $0x34] sm:$0xf]  ;;  %v1139_v27 = vld [vmem:[#allocation2 + $0x38] sm:$0xf0] }
  0x15   :  { %240 = vmatpush.bf16.msra.mxu0 %v1162_v10  ;;  %v1138_v28 = vor.u32 %v1382_v25, %v1137_v24  ;;  %v1142_v29 = vor.u32 %v1381_v26, %v1139_v27  ;;  %v1129_v30 = vld [vmem:[#allocation2 + $0x20] sm:$0xf]  ;;  %v1380_v31 = vld [vmem:[#allocation2 + $0x24] sm:$0xf0]  ;;  %v1379_v32 = vld [vmem:[#allocation2 + $0x24] sm:$0xf] }
  0x16   :  { %289 = vmatpush.bf16.msra.mxu1 %v1166_v11  ;;  %v1131_v33 = vld [vmem:[#allocation2 + $0x28] sm:$0xf0]  ;;  %v1130_v34 = vor.u32 %v1380_v31, %v1129_v30  ;;  %v1121_v36 = vld [vmem:[#allocation2 + $0x10] sm:$0xf]  ;;  %v1378_v37 = vld [vmem:[#allocation2 + $0x14] sm:$0xf0] }
  0x17   :  { %v1134_v35 = vor.u32 %v1379_v32, %v1131_v33  ;;  %v1377_v38 = vld [vmem:[#allocation2 + $0x14] sm:$0xf]  ;;  %v1123_v39 = vld [vmem:[#allocation2 + $0x18] sm:$0xf0]  ;;  %v1122_v40 = vor.u32 %v1378_v37, %v1121_v36  ;;  %v1113_v42 = vld [vmem:[#allocation2] sm:$0xf] }
  0x18   :  { %v1126_v41 = vor.u32 %v1377_v38, %v1123_v39  ;;  %v1376_v43 = vld [vmem:[#allocation2 + $0x4] sm:$0xf0]  ;;  %v1375_v44 = vld [vmem:[#allocation2 + $0x4] sm:$0xf]  ;;  %v1115_v45 = vld [vmem:[#allocation2 + $0x8] sm:$0xf0] }
  0x19   :  { %241 = vmatpush.bf16.msra.mxu0 %v1154_v16  ;;  %v1405_v46 = vld [vmem:[#allocation4 + $0x74] sm:$0xf]  ;;  %v1235_v47 = vld [vmem:[#allocation4 + $0x78] sm:$0xf0]  ;;  %v1114_v50 = vor.u32 %v1376_v43, %v1113_v42  ;;  %v1118_v51 = vor.u32 %v1375_v44, %v1115_v45  ;;  %v1367_v54 = vld [vmem:[%s1750_s0] sm:$0xff] }
  0x1a   :  { %290 = vmatpush.bf16.msra.mxu1 %v1158_v17  ;;  %v1421_v48 = vld [vmem:[#allocation4 + $0xf4] sm:$0xf]  ;;  %v1299_v49 = vld [vmem:[#allocation4 + $0xf8] sm:$0xf0]  ;;  %v1238_v52 = vor.u32 %v1405_v46, %v1235_v47  ;;  %v1403_v55 = vld [vmem:[#allocation4 + $0x64] sm:$0xf] }
  0x1b   :  { %v1302_v53 = vor.u32 %v1421_v48, %v1299_v49  ;;  %v1227_v56 = vld [vmem:[#allocation4 + $0x68] sm:$0xf0]  ;;  %v1419_v57 = vld [vmem:[#allocation4 + $0xe4] sm:$0xf]  ;;  %v1401_v62 = vld [vmem:[#allocation4 + $0x54] sm:$0xf] }
  0x1c   :  { %v1230_v58 = vor.u32 %v1403_v55, %v1227_v56  ;;  %v1291_v59 = vld [vmem:[#allocation4 + $0xe8] sm:$0xf0]  ;;  %v1219_v63 = vld [vmem:[#allocation4 + $0x58] sm:$0xf0]  ;;  %v1417_v0 = vld [vmem:[#allocation4 + $0xd4] sm:$0xf] }
  0x1d   :  { %242 = vmatpush.bf16.msra.mxu0 %v1146_v22  ;;  %v1294_v60 = vor.u32 %v1419_v57, %v1291_v59  ;;  %v1368_v61 = vld [vmem:[%s1750_s0 + $0x8] sm:$0xff]  ;;  %v1222_v1 = vor.u32 %v1401_v62, %v1219_v63  ;;  %v1283_v2 = vld [vmem:[#allocation4 + $0xd8] sm:$0xf0]  ;;  %v1369_v4 = vld [vmem:[%s1750_s0 + $0x10] sm:$0xff] }
  0x1e   :  { %291 = vmatpush.bf16.msra.mxu1 %v1150_v23  ;;  %v1286_v3 = vor.u32 %v1417_v0, %v1283_v2  ;;  %v1399_v5 = vld [vmem:[#allocation4 + $0x44] sm:$0xf]  ;;  %v1211_v6 = vld [vmem:[#allocation4 + $0x48] sm:$0xf0]  ;;  %v1370_v11 = vld [vmem:[%s1750_s0 + $0x18] sm:$0xff] }
  0x1f   :  { %v1415_v7 = vld [vmem:[#allocation4 + $0xc4] sm:$0xf]  ;;  %v1214_v8 = vor.u32 %v1399_v5, %v1211_v6  ;;  %v1275_v9 = vld [vmem:[#allocation4 + $0xc8] sm:$0xf0]  ;;  %v1397_v12 = vld [vmem:[#allocation4 + $0x34] sm:$0xf] }
  0x20   :  { %v1278_v10 = vor.u32 %v1415_v7, %v1275_v9  ;;  %v1203_v13 = vld [vmem:[#allocation4 + $0x38] sm:$0xf0]  ;;  %v1413_v14 = vld [vmem:[#allocation4 + $0xb4] sm:$0xf]  ;;  %v1371_v18 = vld [vmem:[%s1750_s0 + $0x20] sm:$0xff] }
  0x21   :  { %243 = vmatpush.bf16.msra.mxu0 %v1138_v28  ;;  %v1206_v15 = vor.u32 %v1397_v12, %v1203_v13  ;;  %v1267_v16 = vld [vmem:[#allocation4 + $0xb8] sm:$0xf0]  ;;  %v1395_v19 = vld [vmem:[#allocation4 + $0x24] sm:$0xf]  ;;  %v1195_v20 = vld [vmem:[#allocation4 + $0x28] sm:$0xf0] }
  0x22   :  { %292 = vmatpush.bf16.msra.mxu1 %v1142_v29  ;;  %v1270_v17 = vor.u32 %v1413_v14, %v1267_v16  ;;  %v1411_v21 = vld [vmem:[#allocation4 + $0xa4] sm:$0xf]  ;;  %v1198_v22 = vor.u32 %v1395_v19, %v1195_v20  ;;  %v1259_v23 = vld [vmem:[#allocation4 + $0xa8] sm:$0xf0]  ;;  %v1233_v24 = vld [vmem:[#allocation4 + $0x70] sm:$0xf] }
  0x23   :  { %v1406_v25 = vld [vmem:[#allocation4 + $0x74] sm:$0xf0]  ;;  %v1262_v26 = vor.u32 %v1411_v21, %v1259_v23  ;;  %v1297_v28 = vld [vmem:[#allocation4 + $0xf0] sm:$0xf]  ;;  %v1372_v31 = vld [vmem:[%s1750_s0 + $0x28] sm:$0xff] }
  0x24   :  { %v1234_v27 = vor.u32 %v1406_v25, %v1233_v24  ;;  %v1422_v29 = vld [vmem:[#allocation4 + $0xf4] sm:$0xf0]  ;;  %v1225_v32 = vld [vmem:[#allocation4 + $0x60] sm:$0xf]  ;;  %v1404_v33 = vld [vmem:[#allocation4 + $0x64] sm:$0xf0] }
  0x25   :  { %244 = vmatpush.bf16.msra.mxu0 %v1130_v34  ;;  %v1298_v30 = vor.u32 %v1422_v29, %v1297_v28  ;;  %v1289_v34 = vld [vmem:[#allocation4 + $0xe0] sm:$0xf]  ;;  %v1420_v36 = vld [vmem:[#allocation4 + $0xe4] sm:$0xf0]  ;;  %v1393_v38 = vld [vmem:[#allocation4 + $0x14] sm:$0xf] }
  0x26   :  { %293 = vmatpush.bf16.msra.mxu1 %v1134_v35  ;;  %583 = vmatpush.bf16.msra.mxu2 %v1234_v27  ;;  %v1226_v35 = vor.u32 %v1404_v33, %v1225_v32  ;;  %v1290_v37 = vor.u32 %v1420_v36, %v1289_v34  ;;  %v1187_v39 = vld [vmem:[#allocation4 + $0x18] sm:$0xf0]  ;;  %v1402_v42 = vld [vmem:[#allocation4 + $0x54] sm:$0xf0]  ;;  %v1281_v43 = vld [vmem:[#allocation4 + $0xd0] sm:$0xf] }
  0x27   :  { %632 = vmatpush.bf16.msra.mxu3 %v1298_v30  ;;  %v1418_v44 = vld [vmem:[#allocation4 + $0xd4] sm:$0xf0]  ;;  %v1409_v47 = vld [vmem:[#allocation4 + $0x94] sm:$0xf]  ;;  %v1251_v48 = vld [vmem:[#allocation4 + $0x98] sm:$0xf0] }
  0x28   :  { %v1282_v46 = vor.u32 %v1418_v44, %v1281_v43  ;;  %v1209_v49 = vld [vmem:[#allocation4 + $0x40] sm:$0xf]  ;;  %v1201_v56 = vld [vmem:[#allocation4 + $0x30] sm:$0xf]  ;;  %v1398_v57 = vld [vmem:[#allocation4 + $0x34] sm:$0xf0] }
  0x29   :  { %245 = vmatpush.bf16.msra.mxu0 %v1122_v40  ;;  %v1217_v40 = vld [vmem:[#allocation4 + $0x50] sm:$0xf]  ;;  %v1193_v63 = vld [vmem:[#allocation4 + $0x20] sm:$0xf]  ;;  %v1396_v0 = vld [vmem:[#allocation4 + $0x24] sm:$0xf0] }
  0x2a   :  { %294 = vmatpush.bf16.msra.mxu1 %v1126_v41  ;;  %584 = vmatpush.bf16.msra.mxu2 %v1226_v35  ;;  %v1190_v41 = vor.u32 %v1393_v38, %v1187_v39  ;;  %v1218_v45 = vor.u32 %v1402_v42, %v1217_v40  ;;  %v1373_v59 = vld [vmem:[%s1750_s0 + $0x30] sm:$0xff]  ;;  %v1257_v2 = vld [vmem:[#allocation4 + $0xa0] sm:$0xf]  ;;  %v1391_v5 = vld [vmem:[#allocation4 + $0x4] sm:$0xf] }
  0x2b   :  { %633 = vmatpush.bf16.msra.mxu3 %v1290_v37  ;;  %v1179_v6 = vld [vmem:[#allocation4 + $0x8] sm:$0xf0]  ;;  %v1394_v9 = vld [vmem:[#allocation4 + $0x14] sm:$0xf0]  ;;  %v1407_v14 = vld [vmem:[#allocation4 + $0x84] sm:$0xf] }
  0x2c   :  { %v1182_v7 = vor.u32 %v1391_v5, %v1179_v6  ;;  %v1410_v12 = vld [vmem:[#allocation4 + $0x94] sm:$0xf0]  ;;  %v1177_v16 = vld [vmem:[#allocation4] sm:$0xf]  ;;  %v1408_v20 = vld [vmem:[#allocation4 + $0x84] sm:$0xf0] }
  0x2d   :  { %246 = vmatpush.bf16.msra.mxu0 %v1114_v50  ;;  %v1254_v50 = vor.u32 %v1409_v47, %v1251_v48  ;;  %v1241_v19 = vld [vmem:[#allocation4 + $0x80] sm:$0xf]  ;;  %v1374_v23 = vld [vmem:[%s1750_s0 + $0x38] sm:$0xff] }
  0x2e   :  { %295 = vmatpush.bf16.msra.mxu1 %v1118_v51  ;;  %v1400_v51 = vld [vmem:[#allocation4 + $0x44] sm:$0xf0]  ;;  %585 = vmatpush.bf16.msra.mxu2 %v1218_v45  ;;  %v105_v24 = vld [vmem:[%s1752_s2] sm:$0x3]  ;;  %v1430_v29 = vld [vmem:[#allocation6 + $0x38] sm:$0xff] }
  0x2f   :  { %634 = vmatpush.bf16.msra.mxu3 %v1282_v46  ;;  %v1606_v27 = vperm.slane %v105_v24, 0  ;;  %v1608_v28 = vperm.slane %v105_v24, 1  ;;  %v1438_v30 = vld [vmem:[#allocation6 + $0x78] sm:$0xff]  ;;  %v1429_v45 = vld [vmem:[#allocation6 + $0x30] sm:$0xff] }
  0x30   :  { %247 = vmatmul.bf16.vlgmr.msra.gmra.mxu0 %v1367_v54  ;;  %v1437_v46 = vld [vmem:[#allocation6 + $0x70] sm:$0xff] }
  0x31   :  { %681 = vmatpush.bf16.msrb.mxu0 %v1238_v52  ;;  %296 = vmatmul.bf16.vlgmr.msra.gmra.mxu1 %v1367_v54  ;;  %v1273_v52 = vld [vmem:[#allocation4 + $0xc0] sm:$0xf]  ;;  %v1210_v54 = vor.u32 %v1400_v51, %v1209_v49 }
  0x32   :  { %730 = vmatpush.bf16.msrb.mxu1 %v1302_v53  ;;  %v1416_v53 = vld [vmem:[#allocation4 + $0xc4] sm:$0xf0] }
  0x33   :  { %v1274_v55 = vor.u32 %v1416_v53, %v1273_v52  ;;  %586 = vmatpush.bf16.msra.mxu2 %v1210_v54 }
  0x35   :  { %682 = vmatpush.bf16.msrb.mxu0 %v1230_v58  ;;  %635 = vmatpush.bf16.msra.mxu3 %v1274_v55  ;;  %v1265_v58 = vld [vmem:[#allocation4 + $0xb0] sm:$0xf] }
  0x36   :  { %731 = vmatpush.bf16.msrb.mxu1 %v1294_v60  ;;  %v1202_v60 = vor.u32 %v1398_v57, %v1201_v56 }
  0x38   :  { %587 = vmatpush.bf16.msra.mxu2 %v1202_v60 }
  0x39   :  { %683 = vmatpush.bf16.msrb.mxu0 %v1222_v1  ;;  %v1194_v1 = vor.u32 %v1396_v0, %v1193_v63 }
  0x3a   :  { %732 = vmatpush.bf16.msrb.mxu1 %v1286_v3  ;;  %v1412_v3 = vld [vmem:[#allocation4 + $0xa4] sm:$0xf0] }
  0x3c   :  { %588 = vmatpush.bf16.msra.mxu2 %v1194_v1 }
  0x3d   :  { %684 = vmatpush.bf16.msrb.mxu0 %v1214_v8  ;;  %v1185_v8 = vld [vmem:[#allocation4 + $0x10] sm:$0xf] }
  0x3e   :  { %733 = vmatpush.bf16.msrb.mxu1 %v1278_v10  ;;  %v1249_v10 = vld [vmem:[#allocation4 + $0x90] sm:$0xf] }
  0x3f   :  { %v1250_v13 = vor.u32 %v1410_v12, %v1249_v10 }
  0x40   :  { %252 = vmatmul.bf16.gmra.mxu0 %v1368_v61 }
  0x41   :  { %301 = vmatmul.bf16.gmra.mxu1 %v1368_v61  ;;  %685 = vmatpush.bf16.msrb.mxu0 %v1206_v15  ;;  %v1414_v61 = vld [vmem:[#allocation4 + $0xb4] sm:$0xf0]  ;;  %v1243_v15 = vld [vmem:[#allocation4 + $0x88] sm:$0xf0] }
  0x42   :  { %734 = vmatpush.bf16.msrb.mxu1 %v1270_v17  ;;  %v1266_v62 = vor.u32 %v1414_v61, %v1265_v58  ;;  %v1246_v17 = vor.u32 %v1407_v14, %v1243_v15  ;;  %v1428_v61 = vld [vmem:[#allocation6 + $0x28] sm:$0xff]  ;;  %v1435_v14 = vld [vmem:[#allocation6 + $0x60] sm:$0xff] }
  0x44   :  { %636 = vmatpush.bf16.msra.mxu3 %v1266_v62  ;;  %v1436_v62 = vld [vmem:[#allocation6 + $0x68] sm:$0xff] }
  0x45   :  { %686 = vmatpush.bf16.msrb.mxu0 %v1198_v22  ;;  %v1242_v22 = vor.u32 %v1408_v20, %v1241_v19 }
  0x46   :  { %735 = vmatpush.bf16.msrb.mxu1 %v1262_v26 }
  0x49   :  { %687 = vmatpush.bf16.msrb.mxu0 %v1190_v41 }
  0x4a   :  { %736 = vmatpush.bf16.msrb.mxu1 %v1254_v50 }
  0x4d   :  { %688 = vmatpush.bf16.msrb.mxu0 %v1182_v7 }
  0x4e   :  { %737 = vmatpush.bf16.msrb.mxu1 %v1246_v17 }
  0x50   :  { %257 = vmatmul.bf16.gmra.mxu0 %v1369_v4 }
  0x51   :  { %306 = vmatmul.bf16.gmra.mxu1 %v1369_v4  ;;  %v1258_v4 = vor.u32 %v1412_v3, %v1257_v2 }
  0x53   :  { %637 = vmatpush.bf16.msra.mxu3 %v1258_v4 }
  0x57   :  { %638 = vmatpush.bf16.msra.mxu3 %v1250_v13  ;;  %v1427_v13 = vld [vmem:[#allocation6 + $0x20] sm:$0xff] }
  0x5b   :  { %639 = vmatpush.bf16.msra.mxu3 %v1242_v22 }
  0x5f   :  { %1008 = vmatpush.bf16.msrb.mxu3 %v1438_v30 }
  0x60   :  { %262 = vmatmul.bf16.gmra.mxu0 %v1370_v11 }
  0x61   :  { %311 = vmatmul.bf16.gmra.mxu1 %v1370_v11  ;;  %v1186_v11 = vor.u32 %v1394_v9, %v1185_v8 }
  0x63   :  { %589 = vmatpush.bf16.msra.mxu2 %v1186_v11  ;;  %1009 = vmatpush.bf16.msrb.mxu3 %v1437_v46 }
  0x67   :  { %1010 = vmatpush.bf16.msrb.mxu3 %v1436_v62  ;;  %v1424_v62 = vld [vmem:[#allocation6 + $0x8] sm:$0xff] }
  0x6b   :  { %1011 = vmatpush.bf16.msrb.mxu3 %v1435_v14 }
  0x70   :  { %267 = vmatmul.bf16.gmra.mxu0 %v1371_v18 }
  0x71   :  { %316 = vmatmul.bf16.gmra.mxu1 %v1371_v18  ;;  %v1392_v18 = vld [vmem:[#allocation4 + $0x4] sm:$0xf0] }
  0x72   :  { %v1178_v21 = vor.u32 %v1392_v18, %v1177_v16 }
  0x74   :  { %590 = vmatpush.bf16.msra.mxu2 %v1178_v21 }
  0x78   :  { %959 = vmatpush.bf16.msrb.mxu2 %v1430_v29 }
  0x7c   :  { %960 = vmatpush.bf16.msrb.mxu2 %v1429_v45 }
  0x80   :  { %272 = vmatmul.bf16.gmra.mxu0 %v1372_v31  ;;  %961 = vmatpush.bf16.msrb.mxu2 %v1428_v61 }
  0x81   :  { %321 = vmatmul.bf16.gmra.mxu1 %v1372_v31 }
  0x84   :  { %962 = vmatpush.bf16.msrb.mxu2 %v1427_v13 }
  0x90   :  { %277 = vmatmul.bf16.gmra.mxu0 %v1373_v59 }
  0x91   :  { %326 = vmatmul.bf16.gmra.mxu1 %v1373_v59 }
  0xa0   :  { %282 = vmatmul.bf16.gmra.mxu0 %v1374_v23 }
  0xa1   :  { %331 = vmatmul.bf16.gmra.mxu1 %v1374_v23 }
  0xad   :  { %v248_v25 = vpop.f32.mrf.mxu0 }
  0xae   :  { %v297_v26 = vpop.f32.mrf.mxu1  ;;  %v249_v31 = vadd.f32 %v248_v25, %v1606_v27 }
  0xaf   :  { %v298_v32 = vadd.f32 %v297_v26, %v1608_v28 }
  0xb0   :  { %v337_v37 = vmax.f32 %v249_v31, 0.0  ;;  %v1426_v31 = vld [vmem:[#allocation6 + $0x18] sm:$0xff] }
  0xb1   :  { %v338_v39 = vmax.f32 %v298_v32, 0.0  ;;  %v1434_v32 = vld [vmem:[#allocation6 + $0x58] sm:$0xff]  ;;  %963 = vmatpush.bf16.msrb.mxu2 %v1426_v31 }
  0xb2   :  { %1012 = vmatpush.bf16.msrb.mxu3 %v1434_v32 }
  0xb5   :  { %v250_v33 = vpop.f32.mrf.mxu0 }
  0xb6   :  { %v251_v34 = vadd.f32 %v250_v33, %v1606_v27  ;;  %v299_v35 = vpop.f32.mrf.mxu1 }
  0xb7   :  { %v300_v36 = vadd.f32 %v299_v35, %v1608_v28 }
  0xb8   :  { %v339_v38 = vmax.f32 %v251_v34, 0.0 }
  0xb9   :  { %v340_v40 = vmax.f32 %v300_v36, 0.0 }
  0xba   :  { %v369_v41 = vpack.c.bf16 %v339_v38, %v337_v37 }
  0xbb   :  { %v370_v42 = vpack.c.bf16 %v340_v40, %v338_v39 }
  0xbc   :  { %591 = vmatmul.bf16.vlgmr.msra.gmra.mxu2 %v369_v41  ;;  %689 = vmatmul.bf16.vlgmr.msrb.gmra.mxu0 %v369_v41 }
  0xbd   :  { %640 = vmatmul.bf16.vlgmr.msra.gmra.mxu3 %v370_v42  ;;  %738 = vmatmul.bf16.vlgmr.msrb.gmra.mxu1 %v370_v42  ;;  %v253_v43 = vpop.f32.mrf.mxu0 }
  0xbe   :  { %v302_v44 = vpop.f32.mrf.mxu1  ;;  %v254_v47 = vadd.f32 %v253_v43, %v1606_v27 }
  0xbf   :  { %v303_v48 = vadd.f32 %v302_v44, %v1608_v28 }
  0xc0   :  { %v341_v53 = vmax.f32 %v254_v47, 0.0  ;;  %v1425_v47 = vld [vmem:[#allocation6 + $0x10] sm:$0xff] }
  0xc1   :  { %v342_v55 = vmax.f32 %v303_v48, 0.0  ;;  %v1433_v48 = vld [vmem:[#allocation6 + $0x50] sm:$0xff]  ;;  %964 = vmatpush.bf16.msrb.mxu2 %v1425_v47 }
  0xc2   :  { %1013 = vmatpush.bf16.msrb.mxu3 %v1433_v48 }
  0xc5   :  { %v255_v49 = vpop.f32.mrf.mxu0  ;;  %965 = vmatpush.bf16.msrb.mxu2 %v1424_v62 }
  0xc6   :  { %v256_v50 = vadd.f32 %v255_v49, %v1606_v27  ;;  %v304_v51 = vpop.f32.mrf.mxu1 }
  0xc7   :  { %v305_v52 = vadd.f32 %v304_v51, %v1608_v28 }
  0xc8   :  { %v343_v54 = vmax.f32 %v256_v50, 0.0 }
  0xc9   :  { %v344_v56 = vmax.f32 %v305_v52, 0.0 }
  0xca   :  { %v371_v57 = vpack.c.bf16 %v343_v54, %v341_v53 }
  0xcb   :  { %v372_v58 = vpack.c.bf16 %v344_v56, %v342_v55 }
  0xcc   :  { %596 = vmatmul.bf16.gmra.mxu2 %v371_v57  ;;  %694 = vmatmul.bf16.gmra.mxu0 %v371_v57 }
  0xcd   :  { %645 = vmatmul.bf16.gmra.mxu3 %v372_v58  ;;  %743 = vmatmul.bf16.gmra.mxu1 %v372_v58  ;;  %v258_v59 = vpop.f32.mrf.mxu0 }
  0xce   :  { %v307_v60 = vpop.f32.mrf.mxu1  ;;  %v259_v63 = vadd.f32 %v258_v59, %v1606_v27 }
  0xcf   :  { %v308_v0 = vadd.f32 %v307_v60, %v1608_v28 }
  0xd0   :  { %v345_v5 = vmax.f32 %v259_v63, 0.0  ;;  %v1432_v63 = vld [vmem:[#allocation6 + $0x48] sm:$0xff] }
  0xd1   :  { %v346_v7 = vmax.f32 %v308_v0, 0.0  ;;  %1014 = vmatpush.bf16.msrb.mxu3 %v1432_v63 }
  0xd5   :  { %v260_v1 = vpop.f32.mrf.mxu0 }
  0xd6   :  { %v261_v2 = vadd.f32 %v260_v1, %v1606_v27  ;;  %v309_v3 = vpop.f32.mrf.mxu1 }
  0xd7   :  { %v310_v4 = vadd.f32 %v309_v3, %v1608_v28 }
  0xd8   :  { %v347_v6 = vmax.f32 %v261_v2, 0.0 }
  0xd9   :  { %v348_v8 = vmax.f32 %v310_v4, 0.0 }
  0xda   :  { %v373_v9 = vpack.c.bf16 %v347_v6, %v345_v5 }
  0xdb   :  { %v374_v10 = vpack.c.bf16 %v348_v8, %v346_v7 }
  0xdc   :  { %601 = vmatmul.bf16.gmra.mxu2 %v373_v9  ;;  %699 = vmatmul.bf16.gmra.mxu0 %v373_v9 }
  0xdd   :  { %650 = vmatmul.bf16.gmra.mxu3 %v374_v10  ;;  %748 = vmatmul.bf16.gmra.mxu1 %v374_v10  ;;  %v263_v11 = vpop.f32.mrf.mxu0 }
  0xde   :  { %v312_v12 = vpop.f32.mrf.mxu1  ;;  %v264_v15 = vadd.f32 %v263_v11, %v1606_v27 }
  0xdf   :  { %v313_v16 = vadd.f32 %v312_v12, %v1608_v28 }
  0xe0   :  { %v349_v21 = vmax.f32 %v264_v15, 0.0 }
  0xe1   :  { %v350_v23 = vmax.f32 %v313_v16, 0.0  ;;  %v1423_v16 = vld [vmem:[#allocation6] sm:$0xff] }
  0xe2   :  { %966 = vmatpush.bf16.msrb.mxu2 %v1423_v16 }
  0xe5   :  { %v265_v17 = vpop.f32.mrf.mxu0 }
  0xe6   :  { %v266_v18 = vadd.f32 %v265_v17, %v1606_v27  ;;  %v314_v19 = vpop.f32.mrf.mxu1 }
  0xe7   :  { %v315_v20 = vadd.f32 %v314_v19, %v1608_v28 }
  0xe8   :  { %v351_v22 = vmax.f32 %v266_v18, 0.0 }
  0xe9   :  { %v352_v24 = vmax.f32 %v315_v20, 0.0 }
  0xea   :  { %v375_v25 = vpack.c.bf16 %v351_v22, %v349_v21  ;;  %v1431_v21 = vld [vmem:[#allocation6 + $0x40] sm:$0xff] }
  0xeb   :  { %v376_v26 = vpack.c.bf16 %v352_v24, %v350_v23  ;;  %1015 = vmatpush.bf16.msrb.mxu3 %v1431_v21 }
  0xec   :  { %606 = vmatmul.bf16.gmra.mxu2 %v375_v25  ;;  %704 = vmatmul.bf16.gmra.mxu0 %v375_v25 }
  0xed   :  { %655 = vmatmul.bf16.gmra.mxu3 %v376_v26  ;;  %753 = vmatmul.bf16.gmra.mxu1 %v376_v26  ;;  %v268_v29 = vpop.f32.mrf.mxu0 }
  0xee   :  { %v317_v30 = vpop.f32.mrf.mxu1  ;;  %v269_v33 = vadd.f32 %v268_v29, %v1606_v27 }
  0xef   :  { %v318_v34 = vadd.f32 %v317_v30, %v1608_v28 }
  0xf0   :  { %v353_v39 = vmax.f32 %v269_v33, 0.0 }
  0xf1   :  { %v354_v41 = vmax.f32 %v318_v34, 0.0 }
  0xf5   :  { %v270_v35 = vpop.f32.mrf.mxu0 }
  0xf6   :  { %v271_v36 = vadd.f32 %v270_v35, %v1606_v27  ;;  %v319_v37 = vpop.f32.mrf.mxu1 }
  0xf7   :  { %v320_v38 = vadd.f32 %v319_v37, %v1608_v28 }
  0xf8   :  { %v355_v40 = vmax.f32 %v271_v36, 0.0 }
  0xf9   :  { %v356_v42 = vmax.f32 %v320_v38, 0.0 }
  0xfa   :  { %v377_v43 = vpack.c.bf16 %v355_v40, %v353_v39 }
  0xfb   :  { %v378_v44 = vpack.c.bf16 %v356_v42, %v354_v41 }
  0xfc   :  { %611 = vmatmul.bf16.gmra.mxu2 %v377_v43  ;;  %709 = vmatmul.bf16.gmra.mxu0 %v377_v43 }
  0xfd   :  { %660 = vmatmul.bf16.gmra.mxu3 %v378_v44  ;;  %758 = vmatmul.bf16.gmra.mxu1 %v378_v44  ;;  %v273_v45 = vpop.f32.mrf.mxu0 }
  0xfe   :  { %v322_v46 = vpop.f32.mrf.mxu1  ;;  %v274_v49 = vadd.f32 %v273_v45, %v1606_v27 }
  0xff   :  { %v323_v50 = vadd.f32 %v322_v46, %v1608_v28 }
 0x100   :  { %v357_v55 = vmax.f32 %v274_v49, 0.0 }
 0x101   :  { %v358_v57 = vmax.f32 %v323_v50, 0.0 }
 0x105   :  { %v275_v51 = vpop.f32.mrf.mxu0 }
 0x106   :  { %v276_v52 = vadd.f32 %v275_v51, %v1606_v27  ;;  %v324_v53 = vpop.f32.mrf.mxu1 }
 0x107   :  { %v325_v54 = vadd.f32 %v324_v53, %v1608_v28 }
 0x108   :  { %v359_v56 = vmax.f32 %v276_v52, 0.0 }
 0x109   :  { %v360_v58 = vmax.f32 %v325_v54, 0.0 }
 0x10a   :  { %v379_v59 = vpack.c.bf16 %v359_v56, %v357_v55 }
 0x10b   :  { %v380_v60 = vpack.c.bf16 %v360_v58, %v358_v57 }
 0x10c   :  { %616 = vmatmul.bf16.gmra.mxu2 %v379_v59  ;;  %714 = vmatmul.bf16.gmra.mxu0 %v379_v59 }
 0x10d   :  { %665 = vmatmul.bf16.gmra.mxu3 %v380_v60  ;;  %763 = vmatmul.bf16.gmra.mxu1 %v380_v60  ;;  %v278_v61 = vpop.f32.mrf.mxu0 }
 0x10e   :  { %v327_v0 = vpop.f32.mrf.mxu1  ;;  %v279_v1 = vadd.f32 %v278_v61, %v1606_v27 }
 0x10f   :  { %v328_v2 = vadd.f32 %v327_v0, %v1608_v28 }
 0x110   :  { %v361_v7 = vmax.f32 %v279_v1, 0.0 }
 0x111   :  { %v362_v9 = vmax.f32 %v328_v2, 0.0 }
 0x115   :  { %v280_v3 = vpop.f32.mrf.mxu0 }
 0x116   :  { %v281_v4 = vadd.f32 %v280_v3, %v1606_v27  ;;  %v329_v5 = vpop.f32.mrf.mxu1 }
 0x117   :  { %v330_v6 = vadd.f32 %v329_v5, %v1608_v28 }
 0x118   :  { %v363_v8 = vmax.f32 %v281_v4, 0.0 }
 0x119   :  { %v364_v10 = vmax.f32 %v330_v6, 0.0 }
 0x11a   :  { %v381_v11 = vpack.c.bf16 %v363_v8, %v361_v7 }
 0x11b   :  { %v382_v12 = vpack.c.bf16 %v364_v10, %v362_v9 }
 0x11c   :  { %621 = vmatmul.bf16.gmra.mxu2 %v381_v11  ;;  %719 = vmatmul.bf16.gmra.mxu0 %v381_v11 }
 0x11d   :  { %670 = vmatmul.bf16.gmra.mxu3 %v382_v12  ;;  %768 = vmatmul.bf16.gmra.mxu1 %v382_v12  ;;  %v283_v13 = vpop.f32.mrf.mxu0 }
 0x11e   :  { %v332_v14 = vpop.f32.mrf.mxu1  ;;  %v284_v15 = vadd.f32 %v283_v13, %v1606_v27 }
 0x11f   :  { %v333_v17 = vadd.f32 %v332_v14, %v1608_v28 }
 0x120   :  { %v365_v23 = vmax.f32 %v284_v15, 0.0 }
 0x121   :  { %v366_v25 = vmax.f32 %v333_v17, 0.0 }
 0x125   :  { %v285_v18 = vpop.f32.mrf.mxu0 }
 0x126   :  { %v286_v19 = vadd.f32 %v285_v18, %v1606_v27  ;;  %v334_v20 = vpop.f32.mrf.mxu1  ;;  %v417_v27 = vld [vmem:[%s1754_s4] sm:$0x3] }
 0x127   :  { %v335_v22 = vadd.f32 %v334_v20, %v1608_v28  ;;  %v1645_v32 = vperm.slane %v417_v27, 1  ;;  %v1648_v35 = vperm.slane %v417_v27, 0 }
 0x128   :  { %v367_v24 = vmax.f32 %v286_v19, 0.0 }
 0x129   :  { %v368_v26 = vmax.f32 %v335_v22, 0.0 }
 0x12a   :  { %v383_v29 = vpack.c.bf16 %v367_v24, %v365_v23 }
 0x12b   :  { %v384_v30 = vpack.c.bf16 %v368_v26, %v366_v25 }
 0x12c   :  { %626 = vmatmul.bf16.gmra.mxu2 %v383_v29  ;;  %724 = vmatmul.bf16.gmra.mxu0 %v383_v29 }
 0x12d   :  { %675 = vmatmul.bf16.gmra.mxu3 %v384_v30  ;;  %773 = vmatmul.bf16.gmra.mxu1 %v384_v30 }
 0x139   :  { %v690_v31 = vpop.f32.mrf.mxu0 }
 0x13a   :  { %v739_v33 = vpop.f32.mrf.mxu1  ;;  %v691_v28 = vadd.f32 %v690_v31, %v1645_v32 }
 0x13c   :  { %v740_v38 = vadd.f32 %v739_v33, %v691_v28 }
 0x13e   :  { %v780_v43 = vmax.f32 %v740_v38, 0.0 }
 0x13f   :  { %v592_v34 = vpop.f32.mrf.mxu2 }
 0x140   :  { %v641_v36 = vpop.f32.mrf.mxu3  ;;  %v593_v41 = vadd.f32 %v592_v34, %v1648_v35 }
 0x141   :  { %v692_v37 = vpop.f32.mrf.mxu0 }
 0x142   :  { %v693_v39 = vadd.f32 %v692_v37, %v1645_v32  ;;  %v741_v40 = vpop.f32.mrf.mxu1  ;;  %v642_v46 = vadd.f32 %v641_v36, %v593_v41 }
 0x144   :  { %v742_v42 = vadd.f32 %v741_v40, %v693_v39  ;;  %v779_v53 = vmax.f32 %v642_v46, 0.0 }
 0x146   :  { %v782_v44 = vmax.f32 %v742_v42, 0.0 }
 0x147   :  { %v594_v45 = vpop.f32.mrf.mxu2 }
 0x148   :  { %v812_v47 = vpack.c.bf16 %v782_v44, %v780_v43  ;;  %v595_v48 = vadd.f32 %v594_v45, %v1648_v35  ;;  %v643_v49 = vpop.f32.mrf.mxu3 }
 0x149   :  { %v695_v50 = vpop.f32.mrf.mxu0 }
 0x14a   :  { %v644_v51 = vadd.f32 %v643_v49, %v595_v48  ;;  %v744_v52 = vpop.f32.mrf.mxu1  ;;  %1016 = vmatmul.bf16.vlgmr.msrb.gmra.mxu3 %v812_v47  ;;  %v696_v55 = vadd.f32 %v695_v50, %v1645_v32 }
 0x14c   :  { %v781_v54 = vmax.f32 %v644_v51, 0.0  ;;  %v745_v60 = vadd.f32 %v744_v52, %v696_v55 }
 0x14e   :  { %v811_v56 = vpack.c.bf16 %v781_v54, %v779_v53  ;;  %v784_v1 = vmax.f32 %v745_v60, 0.0 }
 0x14f   :  { %v597_v57 = vpop.f32.mrf.mxu2 }
 0x150   :  { %v646_v58 = vpop.f32.mrf.mxu3  ;;  %967 = vmatmul.bf16.vlgmr.msrb.gmra.mxu2 %v811_v56  ;;  %v598_v63 = vadd.f32 %v597_v57, %v1648_v35 }
 0x151   :  { %v697_v59 = vpop.f32.mrf.mxu0 }
 0x152   :  { %v698_v61 = vadd.f32 %v697_v59, %v1645_v32  ;;  %v746_v62 = vpop.f32.mrf.mxu1  ;;  %v647_v4 = vadd.f32 %v646_v58, %v598_v63 }
 0x154   :  { %v747_v0 = vadd.f32 %v746_v62, %v698_v61  ;;  %v783_v11 = vmax.f32 %v647_v4, 0.0 }
 0x156   :  { %v786_v2 = vmax.f32 %v747_v0, 0.0 }
 0x157   :  { %v599_v3 = vpop.f32.mrf.mxu2 }
 0x158   :  { %v600_v5 = vadd.f32 %v599_v3, %v1648_v35  ;;  %v648_v6 = vpop.f32.mrf.mxu3  ;;  %v814_v7 = vpack.c.bf16 %v786_v2, %v784_v1 }
 0x159   :  { %v700_v8 = vpop.f32.mrf.mxu0 }
 0x15a   :  { %v649_v9 = vadd.f32 %v648_v6, %v600_v5  ;;  %v749_v10 = vpop.f32.mrf.mxu1  ;;  %1021 = vmatmul.bf16.gmra.mxu3 %v814_v7  ;;  %v701_v13 = vadd.f32 %v700_v8, %v1645_v32 }
 0x15c   :  { %v785_v12 = vmax.f32 %v649_v9, 0.0  ;;  %v750_v18 = vadd.f32 %v749_v10, %v701_v13 }
 0x15e   :  { %v813_v14 = vpack.c.bf16 %v785_v12, %v783_v11  ;;  %v788_v23 = vmax.f32 %v750_v18, 0.0 }
 0x15f   :  { %v602_v15 = vpop.f32.mrf.mxu2 }
 0x160   :  { %v651_v16 = vpop.f32.mrf.mxu3  ;;  %972 = vmatmul.bf16.gmra.mxu2 %v813_v14  ;;  %v603_v21 = vadd.f32 %v602_v15, %v1648_v35 }
 0x161   :  { %v702_v17 = vpop.f32.mrf.mxu0 }
 0x162   :  { %v703_v19 = vadd.f32 %v702_v17, %v1645_v32  ;;  %v751_v20 = vpop.f32.mrf.mxu1  ;;  %v652_v26 = vadd.f32 %v651_v16, %v603_v21 }
 0x164   :  { %v752_v22 = vadd.f32 %v751_v20, %v703_v19  ;;  %v787_v34 = vmax.f32 %v652_v26, 0.0 }
 0x166   :  { %v790_v24 = vmax.f32 %v752_v22, 0.0 }
 0x167   :  { %v604_v25 = vpop.f32.mrf.mxu2 }
 0x168   :  { %v605_v29 = vadd.f32 %v604_v25, %v1648_v35  ;;  %v653_v30 = vpop.f32.mrf.mxu3  ;;  %v816_v27 = vpack.c.bf16 %v790_v24, %v788_v23 }
 0x169   :  { %v705_v31 = vpop.f32.mrf.mxu0 }
 0x16a   :  { %v654_v33 = vadd.f32 %v653_v30, %v605_v29  ;;  %v754_v28 = vpop.f32.mrf.mxu1  ;;  %1026 = vmatmul.bf16.gmra.mxu3 %v816_v27  ;;  %v706_v37 = vadd.f32 %v705_v31, %v1645_v32 }
 0x16c   :  { %v789_v36 = vmax.f32 %v654_v33, 0.0  ;;  %v755_v42 = vadd.f32 %v754_v28, %v706_v37 }
 0x16e   :  { %v815_v38 = vpack.c.bf16 %v789_v36, %v787_v34  ;;  %v792_v47 = vmax.f32 %v755_v42, 0.0 }
 0x16f   :  { %v607_v39 = vpop.f32.mrf.mxu2 }
 0x170   :  { %v656_v40 = vpop.f32.mrf.mxu3  ;;  %977 = vmatmul.bf16.gmra.mxu2 %v815_v38  ;;  %v608_v45 = vadd.f32 %v607_v39, %v1648_v35 }
 0x171   :  { %v707_v41 = vpop.f32.mrf.mxu0 }
 0x172   :  { %v708_v43 = vadd.f32 %v707_v41, %v1645_v32  ;;  %v756_v44 = vpop.f32.mrf.mxu1  ;;  %v657_v50 = vadd.f32 %v656_v40, %v608_v45 }
 0x174   :  { %v757_v46 = vadd.f32 %v756_v44, %v708_v43  ;;  %v791_v57 = vmax.f32 %v657_v50, 0.0 }
 0x176   :  { %v794_v48 = vmax.f32 %v757_v46, 0.0 }
 0x177   :  { %v609_v49 = vpop.f32.mrf.mxu2 }
 0x178   :  { %v610_v51 = vadd.f32 %v609_v49, %v1648_v35  ;;  %v658_v52 = vpop.f32.mrf.mxu3  ;;  %v818_v53 = vpack.c.bf16 %v794_v48, %v792_v47 }
 0x179   :  { %v710_v54 = vpop.f32.mrf.mxu0 }
 0x17a   :  { %v659_v55 = vadd.f32 %v658_v52, %v610_v51  ;;  %v759_v56 = vpop.f32.mrf.mxu1  ;;  %1031 = vmatmul.bf16.gmra.mxu3 %v818_v53  ;;  %v711_v59 = vadd.f32 %v710_v54, %v1645_v32 }
 0x17c   :  { %v793_v58 = vmax.f32 %v659_v55, 0.0  ;;  %v760_v0 = vadd.f32 %v759_v56, %v711_v59 }
 0x17e   :  { %v817_v60 = vpack.c.bf16 %v793_v58, %v791_v57  ;;  %v796_v5 = vmax.f32 %v760_v0, 0.0 }
 0x17f   :  { %v612_v61 = vpop.f32.mrf.mxu2 }
 0x180   :  { %v661_v62 = vpop.f32.mrf.mxu3  ;;  %982 = vmatmul.bf16.gmra.mxu2 %v817_v60  ;;  %v613_v3 = vadd.f32 %v612_v61, %v1648_v35 }
 0x181   :  { %v712_v63 = vpop.f32.mrf.mxu0 }
 0x182   :  { %v713_v1 = vadd.f32 %v712_v63, %v1645_v32  ;;  %v761_v2 = vpop.f32.mrf.mxu1  ;;  %v662_v8 = vadd.f32 %v661_v62, %v613_v3 }
 0x184   :  { %v762_v4 = vadd.f32 %v761_v2, %v713_v1  ;;  %v795_v15 = vmax.f32 %v662_v8, 0.0 }
 0x186   :  { %v798_v6 = vmax.f32 %v762_v4, 0.0 }
 0x187   :  { %v614_v7 = vpop.f32.mrf.mxu2 }
 0x188   :  { %v820_v9 = vpack.c.bf16 %v798_v6, %v796_v5  ;;  %v615_v10 = vadd.f32 %v614_v7, %v1648_v35  ;;  %v663_v11 = vpop.f32.mrf.mxu3 }
 0x189   :  { %v715_v12 = vpop.f32.mrf.mxu0 }
 0x18a   :  { %v664_v13 = vadd.f32 %v663_v11, %v615_v10  ;;  %v764_v14 = vpop.f32.mrf.mxu1  ;;  %1036 = vmatmul.bf16.gmra.mxu3 %v820_v9  ;;  %v716_v18 = vadd.f32 %v715_v12, %v1645_v32 }
 0x18c   :  { %v797_v16 = vmax.f32 %v664_v13, 0.0  ;;  %v765_v22 = vadd.f32 %v764_v14, %v716_v18 }
 0x18e   :  { %v819_v17 = vpack.c.bf16 %v797_v16, %v795_v15  ;;  %v800_v29 = vmax.f32 %v765_v22, 0.0 }
 0x18f   :  { %v617_v19 = vpop.f32.mrf.mxu2 }
 0x190   :  { %v666_v20 = vpop.f32.mrf.mxu3  ;;  %987 = vmatmul.bf16.gmra.mxu2 %v819_v17  ;;  %v618_v25 = vadd.f32 %v617_v19, %v1648_v35 }
 0x191   :  { %v717_v21 = vpop.f32.mrf.mxu0 }
 0x192   :  { %v718_v23 = vadd.f32 %v717_v21, %v1645_v32  ;;  %v766_v24 = vpop.f32.mrf.mxu1  ;;  %v667_v31 = vadd.f32 %v666_v20, %v618_v25 }
 0x194   :  { %v767_v26 = vadd.f32 %v766_v24, %v718_v23  ;;  %v799_v39 = vmax.f32 %v667_v31, 0.0 }
 0x196   :  { %v802_v30 = vmax.f32 %v767_v26, 0.0 }
 0x197   :  { %v619_v27 = vpop.f32.mrf.mxu2 }
 0x198   :  { %v822_v33 = vpack.c.bf16 %v802_v30, %v800_v29  ;;  %v620_v28 = vadd.f32 %v619_v27, %v1648_v35  ;;  %v668_v34 = vpop.f32.mrf.mxu3 }
 0x199   :  { %v720_v36 = vpop.f32.mrf.mxu0 }
 0x19a   :  { %v669_v37 = vadd.f32 %v668_v34, %v620_v28  ;;  %v769_v38 = vpop.f32.mrf.mxu1  ;;  %1041 = vmatmul.bf16.gmra.mxu3 %v822_v33  ;;  %v721_v42 = vadd.f32 %v720_v36, %v1645_v32 }
 0x19c   :  { %v801_v40 = vmax.f32 %v669_v37, 0.0  ;;  %v770_v46 = vadd.f32 %v769_v38, %v721_v42 }
 0x19e   :  { %v821_v41 = vpack.c.bf16 %v801_v40, %v799_v39  ;;  %v804_v51 = vmax.f32 %v770_v46, 0.0 }
 0x19f   :  { %v622_v43 = vpop.f32.mrf.mxu2 }
 0x1a0   :  { %v671_v44 = vpop.f32.mrf.mxu3  ;;  %992 = vmatmul.bf16.gmra.mxu2 %v821_v41  ;;  %v623_v49 = vadd.f32 %v622_v43, %v1648_v35 }
 0x1a1   :  { %v722_v45 = vpop.f32.mrf.mxu0 }
 0x1a2   :  { %v723_v47 = vadd.f32 %v722_v45, %v1645_v32  ;;  %v771_v48 = vpop.f32.mrf.mxu1  ;;  %v672_v54 = vadd.f32 %v671_v44, %v623_v49 }
 0x1a4   :  { %v772_v50 = vadd.f32 %v771_v48, %v723_v47  ;;  %v803_v61 = vmax.f32 %v672_v54, 0.0 }
 0x1a6   :  { %v806_v52 = vmax.f32 %v772_v50, 0.0 }
 0x1a7   :  { %v624_v53 = vpop.f32.mrf.mxu2 }
 0x1a8   :  { %v824_v55 = vpack.c.bf16 %v806_v52, %v804_v51  ;;  %v625_v56 = vadd.f32 %v624_v53, %v1648_v35  ;;  %v673_v57 = vpop.f32.mrf.mxu3 }
 0x1a9   :  { %v725_v58 = vpop.f32.mrf.mxu0 }
 0x1aa   :  { %v674_v59 = vadd.f32 %v673_v57, %v625_v56  ;;  %v774_v60 = vpop.f32.mrf.mxu1  ;;  %1046 = vmatmul.bf16.gmra.mxu3 %v824_v55  ;;  %v726_v0 = vadd.f32 %v725_v58, %v1645_v32 }
 0x1ac   :  { %v805_v62 = vmax.f32 %v674_v59, 0.0  ;;  %v775_v4 = vadd.f32 %v774_v60, %v726_v0 }
 0x1ae   :  { %v823_v63 = vpack.c.bf16 %v805_v62, %v803_v61  ;;  %v808_v9 = vmax.f32 %v775_v4, 0.0 }
 0x1af   :  { %v627_v1 = vpop.f32.mrf.mxu2 }
 0x1b0   :  { %v676_v2 = vpop.f32.mrf.mxu3  ;;  %997 = vmatmul.bf16.gmra.mxu2 %v823_v63  ;;  %v628_v7 = vadd.f32 %v627_v1, %v1648_v35 }
 0x1b1   :  { %v727_v3 = vpop.f32.mrf.mxu0 }
 0x1b2   :  { %v728_v5 = vadd.f32 %v727_v3, %v1645_v32  ;;  %v776_v6 = vpop.f32.mrf.mxu1  ;;  %v677_v12 = vadd.f32 %v676_v2, %v628_v7  ;;  %v1684_v32 = vld [vmem:[%s1756_s6] ss:$0 sm:$0xff] }
 0x1b4   :  { %v777_v8 = vadd.f32 %v776_v6, %v728_v5  ;;  %v807_v17 = vmax.f32 %v677_v12, 0.0 }
 0x1b6   :  { %v810_v10 = vmax.f32 %v777_v8, 0.0 }
 0x1b7   :  { %v629_v11 = vpop.f32.mrf.mxu2 }
 0x1b8   :  { %v826_v13 = vpack.c.bf16 %v810_v10, %v808_v9  ;;  %v630_v14 = vadd.f32 %v629_v11, %v1648_v35  ;;  %v678_v15 = vpop.f32.mrf.mxu3 }
 0x1ba   :  { %v679_v16 = vadd.f32 %v678_v15, %v630_v14  ;;  %1051 = vmatmul.bf16.gmra.mxu3 %v826_v13 }
 0x1bc   :  { %v809_v18 = vmax.f32 %v679_v16, 0.0 }
 0x1be   :  { %v825_v19 = vpack.c.bf16 %v809_v18, %v807_v17 }
 0x1c0   :  { %1002 = vmatmul.bf16.gmra.mxu2 %v825_v19 }
 0x1cd   :  { %v1017_v20 = vpop.f32.mrf.mxu3 }
 0x1d3   :  { %v968_v21 = vpop.f32.mrf.mxu2 }
 0x1d4   :  { %v969_v22 = vadd.f32 %v1684_v32, %v968_v21 }
 0x1d5   :  { %v1019_v23 = vpop.f32.mrf.mxu3 }
 0x1d6   :  { %v1018_v24 = vadd.f32 %v1017_v20, %v969_v22 }
 0x1d8   :  { %1057 = vst [vmem:[%s1757_s7] sm:$0xff] %v1018_v24 }
 0x1db   :  { %v970_v35 = vpop.f32.mrf.mxu2 }
 0x1dc   :  { %v971_v25 = vadd.f32 %v1684_v32, %v970_v35 }
 0x1dd   :  { %v1022_v26 = vpop.f32.mrf.mxu3 }
 0x1de   :  { %v1020_v29 = vadd.f32 %v1019_v23, %v971_v25 }
 0x1e0   :  { %1058 = vst [vmem:[%s1757_s7 + $0x8] sm:$0xff] %v1020_v29 }
 0x1e3   :  { %v973_v30 = vpop.f32.mrf.mxu2 }
 0x1e4   :  { %v974_v27 = vadd.f32 %v1684_v32, %v973_v30 }
 0x1e5   :  { %v1024_v31 = vpop.f32.mrf.mxu3 }
 0x1e6   :  { %v1023_v33 = vadd.f32 %v1022_v26, %v974_v27 }
 0x1e8   :  { %1059 = vst [vmem:[%s1757_s7 + $0x10] sm:$0xff] %v1023_v33 }
 0x1eb   :  { %v975_v28 = vpop.f32.mrf.mxu2 }
 0x1ec   :  { %v976_v34 = vadd.f32 %v1684_v32, %v975_v28 }
 0x1ed   :  { %v1027_v36 = vpop.f32.mrf.mxu3 }
 0x1ee   :  { %v1025_v37 = vadd.f32 %v1024_v31, %v976_v34 }
 0x1f0   :  { %1060 = vst [vmem:[%s1757_s7 + $0x18] sm:$0xff] %v1025_v37 }
 0x1f3   :  { %v978_v38 = vpop.f32.mrf.mxu2 }
 0x1f4   :  { %v979_v39 = vadd.f32 %v1684_v32, %v978_v38 }
 0x1f5   :  { %v1029_v40 = vpop.f32.mrf.mxu3 }
 0x1f6   :  { %v1028_v41 = vadd.f32 %v1027_v36, %v979_v39 }
 0x1f8   :  { %1061 = vst [vmem:[%s1757_s7 + $0x20] sm:$0xff] %v1028_v41 }
 0x1fb   :  { %v980_v42 = vpop.f32.mrf.mxu2 }
 0x1fc   :  { %v981_v43 = vadd.f32 %v1684_v32, %v980_v42 }
 0x1fd   :  { %v1032_v44 = vpop.f32.mrf.mxu3 }
 0x1fe   :  { %v1030_v45 = vadd.f32 %v1029_v40, %v981_v43 }
 0x200   :  { %1062 = vst [vmem:[%s1757_s7 + $0x28] sm:$0xff] %v1030_v45 }
 0x203   :  { %v983_v46 = vpop.f32.mrf.mxu2 }
 0x204   :  { %v984_v47 = vadd.f32 %v1684_v32, %v983_v46 }
 0x205   :  { %v1034_v48 = vpop.f32.mrf.mxu3 }
 0x206   :  { %v1033_v49 = vadd.f32 %v1032_v44, %v984_v47 }
 0x208   :  { %1063 = vst [vmem:[%s1757_s7 + $0x30] sm:$0xff] %v1033_v49 }
 0x20b   :  { %v985_v50 = vpop.f32.mrf.mxu2 }
 0x20c   :  { %v986_v51 = vadd.f32 %v1684_v32, %v985_v50 }
 0x20d   :  { %v1037_v52 = vpop.f32.mrf.mxu3 }
 0x20e   :  { %v1035_v53 = vadd.f32 %v1034_v48, %v986_v51 }
 0x210   :  { %1064 = vst [vmem:[%s1757_s7 + $0x38] sm:$0xff] %v1035_v53 }
 0x213   :  { %v988_v54 = vpop.f32.mrf.mxu2 }
 0x214   :  { %v989_v55 = vadd.f32 %v1684_v32, %v988_v54 }
 0x215   :  { %v1039_v56 = vpop.f32.mrf.mxu3 }
 0x216   :  { %v1038_v57 = vadd.f32 %v1037_v52, %v989_v55 }
 0x218   :  { %1065 = vst [vmem:[%s1757_s7 + $0x40] sm:$0xff] %v1038_v57 }
 0x21b   :  { %v990_v58 = vpop.f32.mrf.mxu2 }
 0x21c   :  { %v991_v59 = vadd.f32 %v1684_v32, %v990_v58 }
 0x21d   :  { %v1042_v60 = vpop.f32.mrf.mxu3 }
 0x21e   :  { %v1040_v61 = vadd.f32 %v1039_v56, %v991_v59 }
 0x220   :  { %1066 = vst [vmem:[%s1757_s7 + $0x48] sm:$0xff] %v1040_v61 }
 0x223   :  { %v993_v62 = vpop.f32.mrf.mxu2 }
 0x224   :  { %v994_v63 = vadd.f32 %v1684_v32, %v993_v62 }
 0x225   :  { %v1044_v0 = vpop.f32.mrf.mxu3 }
 0x226   :  { %v1043_v1 = vadd.f32 %v1042_v60, %v994_v63 }
 0x228   :  { %1067 = vst [vmem:[%s1757_s7 + $0x50] sm:$0xff] %v1043_v1 }
 0x22b   :  { %v995_v2 = vpop.f32.mrf.mxu2 }
 0x22c   :  { %v996_v3 = vadd.f32 %v1684_v32, %v995_v2 }
 0x22d   :  { %v1047_v5 = vpop.f32.mrf.mxu3 }
 0x22e   :  { %v1045_v4 = vadd.f32 %v1044_v0, %v996_v3 }
 0x230   :  { %1068 = vst [vmem:[%s1757_s7 + $0x58] sm:$0xff] %v1045_v4 }
 0x233   :  { %v998_v6 = vpop.f32.mrf.mxu2 }
 0x234   :  { %v999_v7 = vadd.f32 %v1684_v32, %v998_v6 }
 0x235   :  { %v1049_v9 = vpop.f32.mrf.mxu3 }
 0x236   :  { %v1048_v8 = vadd.f32 %v1047_v5, %v999_v7 }
 0x238   :  { %1069 = vst [vmem:[%s1757_s7 + $0x60] sm:$0xff] %v1048_v8 }
 0x23b   :  { %v1000_v10 = vpop.f32.mrf.mxu2 }
 0x23c   :  { %v1001_v11 = vadd.f32 %v1684_v32, %v1000_v10 }
 0x23d   :  { %v1052_v13 = vpop.f32.mrf.mxu3 }
 0x23e   :  { %v1050_v12 = vadd.f32 %v1049_v9, %v1001_v11 }
 0x240   :  { %1070 = vst [vmem:[%s1757_s7 + $0x68] sm:$0xff] %v1050_v12 }
 0x243   :  { %v1003_v14 = vpop.f32.mrf.mxu2 }
 0x244   :  { %v1004_v15 = vadd.f32 %v1684_v32, %v1003_v14 }
 0x245   :  { %v1054_v19 = vpop.f32.mrf.mxu3 }
 0x246   :  { %v1053_v16 = vadd.f32 %v1052_v13, %v1004_v15 }
 0x248   :  { %1071 = vst [vmem:[%s1757_s7 + $0x70] sm:$0xff] %v1053_v16 }
 0x24b   :  { %v1005_v17 = vpop.f32.mrf.mxu2 }
 0x24c   :  { %v1006_v18 = vadd.f32 %v1684_v32, %v1005_v17 }
 0x24e   :  { %v1055_v20 = vadd.f32 %v1054_v19, %v1006_v18 }
 0x250   :  { %1072 = vst [vmem:[%s1757_s7 + $0x78] sm:$0xff] %v1055_v20 }
 0x251   :  { %1077 = vsyncpa [#allocation3], 1 }
 0x252   :  { %1078 = vsyncpa [#allocation5], 1 }

</bundles_post_ra>
